<compile_context>
chip_gen: v7x
topology: tpu7x:2x2x1
jax: 0.10.0
libtpu: 0.0.40
codegen_flags: <defaults>
</compile_context>

<pallas_src>
import functools

import jax
import jax.numpy as jnp
import numpy as np
from jax import lax
from jax.experimental import pallas as pl
from jax.experimental.pallas import tpu as pltpu


def _basic_block_kernel(x_ref, w1_ref, b1_ref, w2_ref, b2_ref, out_ref,
                        lb_ref, *, H, W, Cp, NB):
    HW = H * W
    G = W + 1                       # guard width: max |row/col shift| = W + 1

    # Zero the halo guards once per grid step; interior writes never touch them.
    lb_ref[:, 0:G] = jnp.zeros((Cp, G), jnp.float32)
    lb_ref[:, G + HW:G + HW + G] = jnp.zeros((Cp, G), jnp.float32)

    # Column-wrap masks built in-kernel (no mask DMA), already at (Cp, HW) so
    # no per-tap broadcast is needed.
    col = lax.broadcasted_iota(jnp.int32, (Cp, HW), 1) % W
    m_left = (col >= 1).astype(jnp.float32)        # zero wrapped col 0   (dw=-1)
    m_right = (col <= W - 2).astype(jnp.float32)   # zero wrapped col W-1 (dw=+1)

    # BN shifts (scales are folded into the bf16 weights); hoisted broadcasts.
    b1 = jnp.broadcast_to(b1_ref[...], (Cp, HW))
    b2 = jnp.broadcast_to(b2_ref[...], (Cp, HW))

    w1 = w1_ref[...]                                # (Cp, 9*Cp) bf16
    w2 = w2_ref[...]

    def conv3x3(src, w_bf16):
        # src: (Cp, HW) f32 value.  Stage it once into the zero-guarded line
        # buffer, then build the (9*Cp, HW) im2col patch as a value (sublane-
        # aligned concat of 8-row pieces) and do ONE MXU matmul:
        #   (Cp, 9*Cp) bf16 @ (9*Cp, HW) bf16 -> (Cp, HW) f32.
        lb_ref[:, G:G + HW] = src
        pieces = []
        for dh in (-1, 0, 1):
            for dw in (-1, 0, 1):
                start = G + dh * W + dw
                piece = lb_ref[:, start:start + HW]        # (Cp, HW) f32
                if dw == -1:
                    piece = piece * m_left
                elif dw == 1:
                    piece = piece * m_right
                pieces.append(piece)
        patch = jnp.concatenate(pieces, axis=0)            # (9*Cp, HW) f32
        return jnp.dot(w_bf16, patch.astype(jnp.bfloat16),
                       preferred_element_type=jnp.float32)

    # Unrolled loop over the NB images of this grid step (amortizes per-step
    # overhead; the single line buffer and the weights are reused).
    for i in range(NB):
        x = x_ref[i]                                       # (Cp, HW) f32
        out1 = jnp.maximum(conv3x3(x, w1) + b1, 0.0)       # conv1 + bn1 + relu
        out2 = conv3x3(out1, w2) + b2                      # conv2 + bn2
        out_ref[i] = jnp.maximum(out2 + x, 0.0)            # residual + relu


def basic_block_pallas(x_nchw, w1_oihw, bn1, w2_oihw, bn2, eps=1e-5):
    N, C, H, W = x_nchw.shape
    assert w1_oihw.shape == (C, C, 3, 3) and w2_oihw.shape == (C, C, 3, 3), \
        "identity shortcut requires in_planes == planes and stride == 1"
    HW = H * W
    G = W + 1
    Cp = ((C + 7) // 8) * 8                    # pad channels to f32 sublane tile

    # Images per grid step: largest divisor of N that is <= 8.
    NB = 1
    for d in range(1, min(N, 8) + 1):
        if N % d == 0:
            NB = d
    grid = (N // NB,)

    # x: (N, C, H, W) -> (N, Cp, HW), zero-padded channels (lane-dense layout).
    x_flat = x_nchw.reshape(N, C, HW)
    if Cp != C:
        x_flat = jnp.pad(x_flat, ((0, 0), (0, Cp - C), (0, 0)))
    x_flat = x_flat.astype(jnp.float32)

    def fold(w_oihw, gamma, beta, mean, var):
        scale = gamma / jnp.sqrt(var + eps)                # (C,)
        shift = beta - mean * scale                        # (C,)
        # Fold BN scale into the conv weights; OIHW -> (Cout, 3, 3, Cin).
        w = jnp.transpose(w_oihw, (0, 2, 3, 1)) * scale[:, None, None, None]
        w = w.reshape(C, 9, C)
        # Zero-pad Cout -> Cp and (per-tap) Cin -> Cp, flatten to (Cp, 9*Cp).
        w = jnp.pad(w, ((0, Cp - C), (0, 0), (0, Cp - C))).reshape(Cp, 9 * Cp)
        shift = jnp.pad(shift, (0, Cp - C)).reshape(Cp, 1)
        return w.astype(jnp.bfloat16), shift.astype(jnp.float32)

    w1m, b1 = fold(w1_oihw, *bn1)
    w2m, b2 = fold(w2_oihw, *bn2)

    kernel = functools.partial(_basic_block_kernel, H=H, W=W, Cp=Cp, NB=NB)
    rep2 = lambda n: (0, 0)                     # replicated params (loaded once)

    out_flat = pl.pallas_call(
        kernel,
        out_shape=jax.ShapeDtypeStruct((N, Cp, HW), jnp.float32),
        grid=grid,
        in_specs=[
            pl.BlockSpec((NB, Cp, HW), lambda n: (n, 0, 0)),   # x (single DMA)
            pl.BlockSpec((Cp, 9 * Cp), rep2),                  # conv1 w (bn1 scale folded)
            pl.BlockSpec((Cp, 1), rep2),                       # bn1 shift
            pl.BlockSpec((Cp, 9 * Cp), rep2),                  # conv2 w (bn2 scale folded)
            pl.BlockSpec((Cp, 1), rep2),                       # bn2 shift
        ],
        out_specs=pl.BlockSpec((NB, Cp, HW), lambda n: (n, 0, 0)),
        scratch_shapes=[
            pltpu.VMEM((Cp, HW + 2 * G), jnp.float32),         # zero-guarded line buffer
        ],
        compiler_params=pltpu.CompilerParams(
            dimension_semantics=("parallel",)),                # batch blocks independent
    )(x_flat, w1m, b1, w2m, b2)

    return out_flat[:, :C, :].reshape(N, C, H, W)


def _ref_forward(x_nchw, w1_oihw, bn1, w2_oihw, bn2, eps=1e-5):
    def conv(x, w):
        return jax.lax.conv_general_dilated(
            x, w, window_strides=(1, 1), padding=((1, 1), (1, 1)),
            dimension_numbers=("NCHW", "OIHW", "NCHW"),
            precision=jax.lax.Precision.HIGHEST)

    def bn(x, p):
        g, b, m, v = p
        inv = g / jnp.sqrt(v + eps)
        return (x - m[None, :, None, None]) * inv[None, :, None, None] \
            + b[None, :, None, None]

    out1 = jax.nn.relu(bn(conv(x_nchw, w1_oihw), bn1))
    out2 = bn(conv(out1, w2_oihw), bn2)
    return jax.nn.relu(out2 + x_nchw)


if __name__ == "__main__":
    N, C, H, W = 2, 4, 16, 16      # in_planes == planes, stride == 1
    key = jax.random.PRNGKey(0)
    ks = jax.random.split(key, 11)

    x_nchw = jax.random.normal(ks[0], (N, C, H, W), jnp.float32)

    w1 = 0.1 * jax.random.normal(ks[1], (C, C, 3, 3), jnp.float32)   # OIHW
    w2 = 0.1 * jax.random.normal(ks[2], (C, C, 3, 3), jnp.float32)   # OIHW
    g1 = 1.0 + 0.1 * jax.random.normal(ks[3], (C,), jnp.float32)
    b1 = 0.1 * jax.random.normal(ks[4], (C,), jnp.float32)
    m1 = 0.1 * jax.random.normal(ks[5], (C,), jnp.float32)
    v1 = 0.5 + jnp.abs(jax.random.normal(ks[6], (C,), jnp.float32))
    g2 = 1.0 + 0.1 * jax.random.normal(ks[7], (C,), jnp.float32)
    b2 = 0.1 * jax.random.normal(ks[8], (C,), jnp.float32)
    m2 = 0.1 * jax.random.normal(ks[9], (C,), jnp.float32)
    v2 = 0.5 + jnp.abs(jax.random.normal(ks[10], (C,), jnp.float32))

    out = basic_block_pallas(x_nchw, w1, (g1, b1, m1, v1), w2, (g2, b2, m2, v2))
    out = jax.block_until_ready(out)

    ref = _ref_forward(x_nchw, w1, (g1, b1, m1, v1), w2, (g2, b2, m2, v2))

    # bf16 MXU operands (f32 accumulation) -> loosened tolerance vs pure f32.
    np.testing.assert_allclose(np.asarray(out), np.asarray(ref),
                               atol=2e-2, rtol=2e-2)
    print("KERNEL_OK")
</pallas_src>

<mosaic_0001>
module attributes {stable_mosaic.version = 11 : i64} {
  func.func @_basic_block_kernel(%arg0: i32, %arg1: memref<2x8x256xf32, #tpu.memory_space<vmem>>, %arg2: memref<8x72xbf16, #tpu.memory_space<vmem>>, %arg3: memref<8x1xf32, #tpu.memory_space<vmem>>, %arg4: memref<8x72xbf16, #tpu.memory_space<vmem>>, %arg5: memref<8x1xf32, #tpu.memory_space<vmem>>, %arg6: memref<2x8x256xf32, #tpu.memory_space<vmem>>, %arg7: memref<8x290xf32, #tpu.memory_space<vmem>>) attributes {dimension_semantics = [#tpu.dimension_semantics<parallel>], iteration_bounds = array<i64: 1>, scalar_prefetch = 0 : i64, scratch_operands = 1 : i64, tpu.core_type = #tpu.core_type<tc>, window_params = [{transform_indices = @transform_0, window_bounds = array<i64: 2, 8, 256>}, {pipeline_mode = #tpu.pipeline_mode<synchronous>, transform_indices = @transform_1, window_bounds = array<i64: 8, 72>}, {pipeline_mode = #tpu.pipeline_mode<synchronous>, transform_indices = @transform_2, window_bounds = array<i64: 8, 1>}, {pipeline_mode = #tpu.pipeline_mode<synchronous>, transform_indices = @transform_3, window_bounds = array<i64: 8, 72>}, {pipeline_mode = #tpu.pipeline_mode<synchronous>, transform_indices = @transform_4, window_bounds = array<i64: 8, 1>}, {transform_indices = @transform_5, window_bounds = array<i64: 2, 8, 256>}]} {
    %cst = arith.constant 0.000000e+00 : f32
    %0 = vector.broadcast %cst : f32 to vector<8x17xf32>
    %c0 = arith.constant 0 : index
    %c0_0 = arith.constant 0 : index
    %1 = vector.load %arg7[%c0, %c0_0] : memref<8x290xf32, #tpu.memory_space<vmem>>, vector<8x17xf32>
    tpu.vector_store %arg7[%c0, %c0_0], %0 {strides = array<i32>} : memref<8x290xf32, #tpu.memory_space<vmem>>, vector<8x17xf32>,
    %cst_1 = arith.constant 0.000000e+00 : f32
    %2 = vector.broadcast %cst_1 : f32 to vector<8x17xf32>
    %c0_2 = arith.constant 0 : index
    %c273 = arith.constant 273 : index
    %3 = vector.load %arg7[%c0_2, %c273] : memref<8x290xf32, #tpu.memory_space<vmem>>, vector<8x17xf32>
    tpu.vector_store %arg7[%c0_2, %c273], %2 {strides = array<i32>} : memref<8x290xf32, #tpu.memory_space<vmem>>, vector<8x17xf32>,
    %4 = tpu.iota {dimensions = array<i32: 1>} : vector<8x256xi32>
    %c16_i32 = arith.constant 16 : i32
    %c0_i32 = arith.constant 0 : i32
    %5 = arith.cmpi eq, %c16_i32, %c0_i32 : i32
    %c1_i32 = arith.constant 1 : i32
    %6 = arith.select %5, %c1_i32, %c16_i32 : i32
    %7 = vector.broadcast %6 : i32 to vector<8x256xi32>
    %8 = arith.remsi %4, %7 : vector<8x256xi32>
    %c0_i32_3 = arith.constant 0 : i32
    %9 = vector.broadcast %c0_i32_3 : i32 to vector<8x256xi32>
    %10 = arith.cmpi ne, %8, %9 : vector<8x256xi32>
    %c0_i32_4 = arith.constant 0 : i32
    %11 = vector.broadcast %c0_i32_4 : i32 to vector<8x256xi32>
    %12 = arith.cmpi slt, %8, %11 : vector<8x256xi32>
    %c0_i32_5 = arith.constant 0 : i32
    %13 = arith.cmpi slt, %6, %c0_i32_5 : i32
    %14 = vector.broadcast %13 : i1 to vector<8x256xi1>
    %15 = vector.broadcast %14 : vector<8x256xi1> to vector<8x256xi1>
    %16 = arith.xori %12, %15 : vector<8x256xi1>
    %17 = arith.andi %16, %10 : vector<8x256xi1>
    %18 = vector.broadcast %6 : i32 to vector<8x256xi32>
    %19 = arith.addi %8, %18 : vector<8x256xi32>
    %20 = arith.select %17, %19, %8 : vector<8x256xi1>, vector<8x256xi32>
    %c1_i32_6 = arith.constant 1 : i32
    %21 = vector.broadcast %c1_i32_6 : i32 to vector<8x256xi32>
    %22 = arith.cmpi sge, %20, %21 : vector<8x256xi32>
    %23 = arith.extui %22 : vector<8x256xi1> to vector<8x256xi32>
    %24 = arith.sitofp %23 : vector<8x256xi32> to vector<8x256xf32>
    %c14_i32 = arith.constant 14 : i32
    %25 = vector.broadcast %c14_i32 : i32 to vector<8x256xi32>
    %26 = arith.cmpi sle, %20, %25 : vector<8x256xi32>
    %27 = arith.extui %26 : vector<8x256xi1> to vector<8x256xi32>
    %28 = arith.sitofp %27 : vector<8x256xi32> to vector<8x256xf32>
    %c0_7 = arith.constant 0 : index
    %c0_8 = arith.constant 0 : index
    %29 = vector.load %arg3[%c0_7, %c0_8] : memref<8x1xf32, #tpu.memory_space<vmem>>, vector<8x1xf32>
    %30 = vector.shape_cast %29 : vector<8x1xf32> to vector<8x1xf32>
    %31 = vector.broadcast %30 : vector<8x1xf32> to vector<8x256xf32>
    %c0_9 = arith.constant 0 : index
    %c0_10 = arith.constant 0 : index
    %32 = vector.load %arg5[%c0_9, %c0_10] : memref<8x1xf32, #tpu.memory_space<vmem>>, vector<8x1xf32>
    %33 = vector.shape_cast %32 : vector<8x1xf32> to vector<8x1xf32>
    %34 = vector.broadcast %33 : vector<8x1xf32> to vector<8x256xf32>
    %c0_11 = arith.constant 0 : index
    %c0_12 = arith.constant 0 : index
    %35 = vector.load %arg2[%c0_11, %c0_12] : memref<8x72xbf16, #tpu.memory_space<vmem>>, vector<8x72xbf16>
    %c0_13 = arith.constant 0 : index
    %c0_14 = arith.constant 0 : index
    %36 = vector.load %arg4[%c0_13, %c0_14] : memref<8x72xbf16, #tpu.memory_space<vmem>>, vector<8x72xbf16>
    %c0_15 = arith.constant 0 : index
    %c0_16 = arith.constant 0 : index
    %c0_17 = arith.constant 0 : index
    %37 = vector.load %arg1[%c0_15, %c0_16, %c0_17] : memref<2x8x256xf32, #tpu.memory_space<vmem>>, vector<1x8x256xf32>
    %38 = vector.shape_cast %37 : vector<1x8x256xf32> to vector<8x256xf32>
    %c0_18 = arith.constant 0 : index
    %c17 = arith.constant 17 : index
    %39 = vector.load %arg7[%c0_18, %c17] : memref<8x290xf32, #tpu.memory_space<vmem>>, vector<8x256xf32>
    tpu.vector_store %arg7[%c0_18, %c17], %38 {strides = array<i32>} : memref<8x290xf32, #tpu.memory_space<vmem>>, vector<8x256xf32>,
    %c0_19 = arith.constant 0 : index
    %c0_20 = arith.constant 0 : index
    %40 = vector.load %arg7[%c0_19, %c0_20] : memref<8x290xf32, #tpu.memory_space<vmem>>, vector<8x256xf32>
    %41 = arith.mulf %40, %24 : vector<8x256xf32>
    %c0_21 = arith.constant 0 : index
    %c1 = arith.constant 1 : index
    %42 = vector.load %arg7[%c0_21, %c1] : memref<8x290xf32, #tpu.memory_space<vmem>>, vector<8x256xf32>
    %c0_22 = arith.constant 0 : index
    %c2 = arith.constant 2 : index
    %43 = vector.load %arg7[%c0_22, %c2] : memref<8x290xf32, #tpu.memory_space<vmem>>, vector<8x256xf32>
    %44 = arith.mulf %43, %28 : vector<8x256xf32>
    %c0_23 = arith.constant 0 : index
    %c16 = arith.constant 16 : index
    %45 = vector.load %arg7[%c0_23, %c16] : memref<8x290xf32, #tpu.memory_space<vmem>>, vector<8x256xf32>
    %46 = arith.mulf %45, %24 : vector<8x256xf32>
    %c0_24 = arith.constant 0 : index
    %c17_25 = arith.constant 17 : index
    %47 = vector.load %arg7[%c0_24, %c17_25] : memref<8x290xf32, #tpu.memory_space<vmem>>, vector<8x256xf32>
    %c0_26 = arith.constant 0 : index
    %c18 = arith.constant 18 : index
    %48 = vector.load %arg7[%c0_26, %c18] : memref<8x290xf32, #tpu.memory_space<vmem>>, vector<8x256xf32>
    %49 = arith.mulf %48, %28 : vector<8x256xf32>
    %c0_27 = arith.constant 0 : index
    %c32 = arith.constant 32 : index
    %50 = vector.load %arg7[%c0_27, %c32] : memref<8x290xf32, #tpu.memory_space<vmem>>, vector<8x256xf32>
    %51 = arith.mulf %50, %24 : vector<8x256xf32>
    %c0_28 = arith.constant 0 : index
    %c33 = arith.constant 33 : index
    %52 = vector.load %arg7[%c0_28, %c33] : memref<8x290xf32, #tpu.memory_space<vmem>>, vector<8x256xf32>
    %c0_29 = arith.constant 0 : index
    %c34 = arith.constant 34 : index
    %53 = vector.load %arg7[%c0_29, %c34] : memref<8x290xf32, #tpu.memory_space<vmem>>, vector<8x256xf32>
    %54 = arith.mulf %53, %28 : vector<8x256xf32>
    %55 = tpu.concatenate %41, %42, %44, %46, %47, %49, %51, %52, %54 in 0 : vector<8x256xf32>, vector<8x256xf32>, vector<8x256xf32>, vector<8x256xf32>, vector<8x256xf32>, vector<8x256xf32>, vector<8x256xf32>, vector<8x256xf32>, vector<8x256xf32> -> vector<72x256xf32>
    %56 = arith.truncf %55 : vector<72x256xf32> to vector<72x256xbf16>
    %cst_30 = arith.constant dense<0.000000e+00> : vector<8x256xf32>
    %57 = tpu.matmul %35, %56, %cst_30 {dimension_numbers = #tpu.dot_dimension_numbers<[1], [0], [0], [1], [0, 0, 1, 1], [], []>} : vector<8x72xbf16>, vector<72x256xbf16>, vector<8x256xf32> -> vector<8x256xf32>
    %58 = arith.addf %57, %31 : vector<8x256xf32>
    %cst_31 = arith.constant 0.000000e+00 : f32
    %59 = vector.broadcast %cst_31 : f32 to vector<8x256xf32>
    %60 = arith.maximumf %58, %59 : vector<8x256xf32>
    %c0_32 = arith.constant 0 : index
    %c17_33 = arith.constant 17 : index
    %61 = vector.load %arg7[%c0_32, %c17_33] : memref<8x290xf32, #tpu.memory_space<vmem>>, vector<8x256xf32>
    tpu.vector_store %arg7[%c0_32, %c17_33], %60 {strides = array<i32>} : memref<8x290xf32, #tpu.memory_space<vmem>>, vector<8x256xf32>,
    %c0_34 = arith.constant 0 : index
    %c0_35 = arith.constant 0 : index
    %62 = vector.load %arg7[%c0_34, %c0_35] : memref<8x290xf32, #tpu.memory_space<vmem>>, vector<8x256xf32>
    %63 = arith.mulf %62, %24 : vector<8x256xf32>
    %c0_36 = arith.constant 0 : index
    %c1_37 = arith.constant 1 : index
    %64 = vector.load %arg7[%c0_36, %c1_37] : memref<8x290xf32, #tpu.memory_space<vmem>>, vector<8x256xf32>
    %c0_38 = arith.constant 0 : index
    %c2_39 = arith.constant 2 : index
    %65 = vector.load %arg7[%c0_38, %c2_39] : memref<8x290xf32, #tpu.memory_space<vmem>>, vector<8x256xf32>
    %66 = arith.mulf %65, %28 : vector<8x256xf32>
    %c0_40 = arith.constant 0 : index
    %c16_41 = arith.constant 16 : index
    %67 = vector.load %arg7[%c0_40, %c16_41] : memref<8x290xf32, #tpu.memory_space<vmem>>, vector<8x256xf32>
    %68 = arith.mulf %67, %24 : vector<8x256xf32>
    %c0_42 = arith.constant 0 : index
    %c17_43 = arith.constant 17 : index
    %69 = vector.load %arg7[%c0_42, %c17_43] : memref<8x290xf32, #tpu.memory_space<vmem>>, vector<8x256xf32>
    %c0_44 = arith.constant 0 : index
    %c18_45 = arith.constant 18 : index
    %70 = vector.load %arg7[%c0_44, %c18_45] : memref<8x290xf32, #tpu.memory_space<vmem>>, vector<8x256xf32>
    %71 = arith.mulf %70, %28 : vector<8x256xf32>
    %c0_46 = arith.constant 0 : index
    %c32_47 = arith.constant 32 : index
    %72 = vector.load %arg7[%c0_46, %c32_47] : memref<8x290xf32, #tpu.memory_space<vmem>>, vector<8x256xf32>
    %73 = arith.mulf %72, %24 : vector<8x256xf32>
    %c0_48 = arith.constant 0 : index
    %c33_49 = arith.constant 33 : index
    %74 = vector.load %arg7[%c0_48, %c33_49] : memref<8x290xf32, #tpu.memory_space<vmem>>, vector<8x256xf32>
    %c0_50 = arith.constant 0 : index
    %c34_51 = arith.constant 34 : index
    %75 = vector.load %arg7[%c0_50, %c34_51] : memref<8x290xf32, #tpu.memory_space<vmem>>, vector<8x256xf32>
    %76 = arith.mulf %75, %28 : vector<8x256xf32>
    %77 = tpu.concatenate %63, %64, %66, %68, %69, %71, %73, %74, %76 in 0 : vector<8x256xf32>, vector<8x256xf32>, vector<8x256xf32>, vector<8x256xf32>, vector<8x256xf32>, vector<8x256xf32>, vector<8x256xf32>, vector<8x256xf32>, vector<8x256xf32> -> vector<72x256xf32>
    %78 = arith.truncf %77 : vector<72x256xf32> to vector<72x256xbf16>
    %cst_52 = arith.constant dense<0.000000e+00> : vector<8x256xf32>
    %79 = tpu.matmul %36, %78, %cst_52 {dimension_numbers = #tpu.dot_dimension_numbers<[1], [0], [0], [1], [0, 0, 1, 1], [], []>} : vector<8x72xbf16>, vector<72x256xbf16>, vector<8x256xf32> -> vector<8x256xf32>
    %80 = arith.addf %79, %34 : vector<8x256xf32>
    %81 = arith.addf %80, %38 : vector<8x256xf32>
    %cst_53 = arith.constant 0.000000e+00 : f32
    %82 = vector.broadcast %cst_53 : f32 to vector<8x256xf32>
    %83 = arith.maximumf %81, %82 : vector<8x256xf32>
    %c0_54 = arith.constant 0 : index
    %c0_55 = arith.constant 0 : index
    %c0_56 = arith.constant 0 : index
    %84 = vector.load %arg6[%c0_54, %c0_55, %c0_56] : memref<2x8x256xf32, #tpu.memory_space<vmem>>, vector<1x8x256xf32>
    %85 = vector.shape_cast %84 : vector<1x8x256xf32> to vector<8x256xf32>
    %86 = vector.shape_cast %83 : vector<8x256xf32> to vector<1x8x256xf32>
    tpu.vector_store %arg6[%c0_54, %c0_55, %c0_56], %86 {strides = array<i32>} : memref<2x8x256xf32, #tpu.memory_space<vmem>>, vector<1x8x256xf32>,
    %c1_57 = arith.constant 1 : index
    %c0_58 = arith.constant 0 : index
    %c0_59 = arith.constant 0 : index
    %87 = vector.load %arg1[%c1_57, %c0_58, %c0_59] : memref<2x8x256xf32, #tpu.memory_space<vmem>>, vector<1x8x256xf32>
    %88 = vector.shape_cast %87 : vector<1x8x256xf32> to vector<8x256xf32>
    %c0_60 = arith.constant 0 : index
    %c17_61 = arith.constant 17 : index
    %89 = vector.load %arg7[%c0_60, %c17_61] : memref<8x290xf32, #tpu.memory_space<vmem>>, vector<8x256xf32>
    tpu.vector_store %arg7[%c0_60, %c17_61], %88 {strides = array<i32>} : memref<8x290xf32, #tpu.memory_space<vmem>>, vector<8x256xf32>,
    %c0_62 = arith.constant 0 : index
    %c0_63 = arith.constant 0 : index
    %90 = vector.load %arg7[%c0_62, %c0_63] : memref<8x290xf32, #tpu.memory_space<vmem>>, vector<8x256xf32>
    %91 = arith.mulf %90, %24 : vector<8x256xf32>
    %c0_64 = arith.constant 0 : index
    %c1_65 = arith.constant 1 : index
    %92 = vector.load %arg7[%c0_64, %c1_65] : memref<8x290xf32, #tpu.memory_space<vmem>>, vector<8x256xf32>
    %c0_66 = arith.constant 0 : index
    %c2_67 = arith.constant 2 : index
    %93 = vector.load %arg7[%c0_66, %c2_67] : memref<8x290xf32, #tpu.memory_space<vmem>>, vector<8x256xf32>
    %94 = arith.mulf %93, %28 : vector<8x256xf32>
    %c0_68 = arith.constant 0 : index
    %c16_69 = arith.constant 16 : index
    %95 = vector.load %arg7[%c0_68, %c16_69] : memref<8x290xf32, #tpu.memory_space<vmem>>, vector<8x256xf32>
    %96 = arith.mulf %95, %24 : vector<8x256xf32>
    %c0_70 = arith.constant 0 : index
    %c17_71 = arith.constant 17 : index
    %97 = vector.load %arg7[%c0_70, %c17_71] : memref<8x290xf32, #tpu.memory_space<vmem>>, vector<8x256xf32>
    %c0_72 = arith.constant 0 : index
    %c18_73 = arith.constant 18 : index
    %98 = vector.load %arg7[%c0_72, %c18_73] : memref<8x290xf32, #tpu.memory_space<vmem>>, vector<8x256xf32>
    %99 = arith.mulf %98, %28 : vector<8x256xf32>
    %c0_74 = arith.constant 0 : index
    %c32_75 = arith.constant 32 : index
    %100 = vector.load %arg7[%c0_74, %c32_75] : memref<8x290xf32, #tpu.memory_space<vmem>>, vector<8x256xf32>
    %101 = arith.mulf %100, %24 : vector<8x256xf32>
    %c0_76 = arith.constant 0 : index
    %c33_77 = arith.constant 33 : index
    %102 = vector.load %arg7[%c0_76, %c33_77] : memref<8x290xf32, #tpu.memory_space<vmem>>, vector<8x256xf32>
    %c0_78 = arith.constant 0 : index
    %c34_79 = arith.constant 34 : index
    %103 = vector.load %arg7[%c0_78, %c34_79] : memref<8x290xf32, #tpu.memory_space<vmem>>, vector<8x256xf32>
    %104 = arith.mulf %103, %28 : vector<8x256xf32>
    %105 = tpu.concatenate %91, %92, %94, %96, %97, %99, %101, %102, %104 in 0 : vector<8x256xf32>, vector<8x256xf32>, vector<8x256xf32>, vector<8x256xf32>, vector<8x256xf32>, vector<8x256xf32>, vector<8x256xf32>, vector<8x256xf32>, vector<8x256xf32> -> vector<72x256xf32>
    %106 = arith.truncf %105 : vector<72x256xf32> to vector<72x256xbf16>
    %cst_80 = arith.constant dense<0.000000e+00> : vector<8x256xf32>
    %107 = tpu.matmul %35, %106, %cst_80 {dimension_numbers = #tpu.dot_dimension_numbers<[1], [0], [0], [1], [0, 0, 1, 1], [], []>} : vector<8x72xbf16>, vector<72x256xbf16>, vector<8x256xf32> -> vector<8x256xf32>
    %108 = arith.addf %107, %31 : vector<8x256xf32>
    %cst_81 = arith.constant 0.000000e+00 : f32
    %109 = vector.broadcast %cst_81 : f32 to vector<8x256xf32>
    %110 = arith.maximumf %108, %109 : vector<8x256xf32>
    %c0_82 = arith.constant 0 : index
    %c17_83 = arith.constant 17 : index
    %111 = vector.load %arg7[%c0_82, %c17_83] : memref<8x290xf32, #tpu.memory_space<vmem>>, vector<8x256xf32>
    tpu.vector_store %arg7[%c0_82, %c17_83], %110 {strides = array<i32>} : memref<8x290xf32, #tpu.memory_space<vmem>>, vector<8x256xf32>,
    %c0_84 = arith.constant 0 : index
    %c0_85 = arith.constant 0 : index
    %112 = vector.load %arg7[%c0_84, %c0_85] : memref<8x290xf32, #tpu.memory_space<vmem>>, vector<8x256xf32>
    %113 = arith.mulf %112, %24 : vector<8x256xf32>
    %c0_86 = arith.constant 0 : index
    %c1_87 = arith.constant 1 : index
    %114 = vector.load %arg7[%c0_86, %c1_87] : memref<8x290xf32, #tpu.memory_space<vmem>>, vector<8x256xf32>
    %c0_88 = arith.constant 0 : index
    %c2_89 = arith.constant 2 : index
    %115 = vector.load %arg7[%c0_88, %c2_89] : memref<8x290xf32, #tpu.memory_space<vmem>>, vector<8x256xf32>
    %116 = arith.mulf %115, %28 : vector<8x256xf32>
    %c0_90 = arith.constant 0 : index
    %c16_91 = arith.constant 16 : index
    %117 = vector.load %arg7[%c0_90, %c16_91] : memref<8x290xf32, #tpu.memory_space<vmem>>, vector<8x256xf32>
    %118 = arith.mulf %117, %24 : vector<8x256xf32>
    %c0_92 = arith.constant 0 : index
    %c17_93 = arith.constant 17 : index
    %119 = vector.load %arg7[%c0_92, %c17_93] : memref<8x290xf32, #tpu.memory_space<vmem>>, vector<8x256xf32>
    %c0_94 = arith.constant 0 : index
    %c18_95 = arith.constant 18 : index
    %120 = vector.load %arg7[%c0_94, %c18_95] : memref<8x290xf32, #tpu.memory_space<vmem>>, vector<8x256xf32>
    %121 = arith.mulf %120, %28 : vector<8x256xf32>
    %c0_96 = arith.constant 0 : index
    %c32_97 = arith.constant 32 : index
    %122 = vector.load %arg7[%c0_96, %c32_97] : memref<8x290xf32, #tpu.memory_space<vmem>>, vector<8x256xf32>
    %123 = arith.mulf %122, %24 : vector<8x256xf32>
    %c0_98 = arith.constant 0 : index
    %c33_99 = arith.constant 33 : index
    %124 = vector.load %arg7[%c0_98, %c33_99] : memref<8x290xf32, #tpu.memory_space<vmem>>, vector<8x256xf32>
    %c0_100 = arith.constant 0 : index
    %c34_101 = arith.constant 34 : index
    %125 = vector.load %arg7[%c0_100, %c34_101] : memref<8x290xf32, #tpu.memory_space<vmem>>, vector<8x256xf32>
    %126 = arith.mulf %125, %28 : vector<8x256xf32>
    %127 = tpu.concatenate %113, %114, %116, %118, %119, %121, %123, %124, %126 in 0 : vector<8x256xf32>, vector<8x256xf32>, vector<8x256xf32>, vector<8x256xf32>, vector<8x256xf32>, vector<8x256xf32>, vector<8x256xf32>, vector<8x256xf32>, vector<8x256xf32> -> vector<72x256xf32>
    %128 = arith.truncf %127 : vector<72x256xf32> to vector<72x256xbf16>
    %cst_102 = arith.constant dense<0.000000e+00> : vector<8x256xf32>
    %129 = tpu.matmul %36, %128, %cst_102 {dimension_numbers = #tpu.dot_dimension_numbers<[1], [0], [0], [1], [0, 0, 1, 1], [], []>} : vector<8x72xbf16>, vector<72x256xbf16>, vector<8x256xf32> -> vector<8x256xf32>
    %130 = arith.addf %129, %34 : vector<8x256xf32>
    %131 = arith.addf %130, %88 : vector<8x256xf32>
    %cst_103 = arith.constant 0.000000e+00 : f32
    %132 = vector.broadcast %cst_103 : f32 to vector<8x256xf32>
    %133 = arith.maximumf %131, %132 : vector<8x256xf32>
    %c1_104 = arith.constant 1 : index
    %c0_105 = arith.constant 0 : index
    %c0_106 = arith.constant 0 : index
    %134 = vector.load %arg6[%c1_104, %c0_105, %c0_106] : memref<2x8x256xf32, #tpu.memory_space<vmem>>, vector<1x8x256xf32>
    %135 = vector.shape_cast %134 : vector<1x8x256xf32> to vector<8x256xf32>
    %136 = vector.shape_cast %133 : vector<8x256xf32> to vector<1x8x256xf32>
    tpu.vector_store %arg6[%c1_104, %c0_105, %c0_106], %136 {strides = array<i32>} : memref<2x8x256xf32, #tpu.memory_space<vmem>>, vector<1x8x256xf32>,
    return
  }
  func.func @transform_0(%arg0: i32) -> (i32, i32, i32) {
    %c0_i32 = arith.constant 0 : i32
    %c0_i32_0 = arith.constant 0 : i32
    %c0_i32_1 = arith.constant 0 : i32
    return %arg0, %c0_i32, %c0_i32_0 : i32, i32, i32
  }
  func.func @transform_1(%arg0: i32) -> (i32, i32) {
    %c0_i32 = arith.constant 0 : i32
    %c0_i32_0 = arith.constant 0 : i32
    %c0_i32_1 = arith.constant 0 : i32
    return %c0_i32, %c0_i32_0 : i32, i32
  }
  func.func @transform_2(%arg0: i32) -> (i32, i32) {
    %c0_i32 = arith.constant 0 : i32
    %c0_i32_0 = arith.constant 0 : i32
    %c0_i32_1 = arith.constant 0 : i32
    return %c0_i32, %c0_i32_0 : i32, i32
  }
  func.func @transform_3(%arg0: i32) -> (i32, i32) {
    %c0_i32 = arith.constant 0 : i32
    %c0_i32_0 = arith.constant 0 : i32
    %c0_i32_1 = arith.constant 0 : i32
    return %c0_i32, %c0_i32_0 : i32, i32
  }
  func.func @transform_4(%arg0: i32) -> (i32, i32) {
    %c0_i32 = arith.constant 0 : i32
    %c0_i32_0 = arith.constant 0 : i32
    %c0_i32_1 = arith.constant 0 : i32
    return %c0_i32, %c0_i32_0 : i32, i32
  }
  func.func @transform_5(%arg0: i32) -> (i32, i32, i32) {
    %c0_i32 = arith.constant 0 : i32
    %c0_i32_0 = arith.constant 0 : i32
    %c0_i32_1 = arith.constant 0 : i32
    return %arg0, %c0_i32, %c0_i32_0 : i32, i32, i32
  }
}

</mosaic_0001>

<bundles_post_ra>
// kernel: tpu_custom_call.1
= control target key start
LH: loop header
LB: loop body
LE: loop exit
PB: predicated region body
PF: predicated region fallthrough
CT: control target
= control target key end

     0   :  { %10 = vsyncpa [#allocation4], 0  ;;  %s1765_s0 = inlined_call_operand.hbm [shape: f32[2,8,256], index: 0, kind: input, shape index: {}]   ;;  %s1766_s1 = inlined_call_operand.vmem [shape: bf16[8,72], index: 1, kind: input, shape index: {}]   ;;  %s1767_s2 = inlined_call_operand.vmem [shape: f32[8,1], index: 2, kind: input, shape index: {}]   ;;  %s1768_s3 = inlined_call_operand.vmem [shape: bf16[8,72], index: 3, kind: input, shape index: {}]   ;;  %s1769_s4 = inlined_call_operand.vmem [shape: f32[8,1], index: 4, kind: input, shape index: {}]   ;;  %s1770_s5 = inlined_call_operand.hbm [shape: f32[2,8,256], index: 5, kind: output, shape index: {}]  }
   0x1   :  { %11 = vsyncpa [#allocation5], 0  ;;  %s1238_s18 = smov [#allocation3]   ;;  %s1190_s22 = scalar_lea.hbm %s1765_s0, 512 }
   0x2   :  { %s17_s19 = sshll.u32 %s1238_s18, 4  ;;  %p1191_p0 = scmp.ne.s32.totalorder %s1765_s0, %s1190_s22  ;;  %s18_s19 = int_to_ptr.vmem [resolvable:$true] %s17_s19 }
   0x3   :  { %p1194_p1 = scmp.lt.u32.totalorder %s1190_s22, %s1765_s0 }
   0x5   :  { %p1196_p2 = pnand %p1194_p1, %p1191_p0 }
   0x7   :  { %1199 = shalt.err (!%p1196_p2)
}
   0x8   :  { %s1200_s27 = scalar_lea.vmem %s18_s19, 512  ;;  %p1205_p4 = scmp.lt.s32.totalorder %s18_s19, %s18_s19 }
   0x9   :  { %p1201_p3 = scmp.ne.s32.totalorder %s18_s19, %s1200_s27  ;;  %p1206_p5 = scmp.lt.s32.totalorder %s1200_s27, %s1200_s27 }
   0xb   :  { %p1207_p6 = por %p1206_p5, %p1205_p4 }
   0xd   :  { %p1208_p7 = pnand %p1207_p6, %p1201_p3 }
   0xf   :  { %1211 = shalt.err (!%p1208_p7)
}
  0x10   :  { %s1239_s28 = smov 256   ;;  %s1240_s29 = smov 16  }
  0x11   :  { %23 = dma.hbm_to_vmem [thread:$0]  %s1765_s0, 512, %s18_s19, [#allocation4], %s1239_s28, %s1239_s28, %s1240_s29  }
  0x12   :  { %1234 = dma.done.wait [#allocation4], 512  }
  0x13   :  { %1235 = vsyncadd [#allocation4], 4294966784  ;;  %v40_v0 = vlaneseq  ;;  %vm36_vm0 = vcmask 138240   ;;  %v1241_v1 = vmov 0.0   ;;  %vm38_vm1 = vcmask 277640   ;;  %v93_v6 = vld [vmem:[#allocation3] sm:$0xff] }
  0x14   :  { %37 = vst.msk [vmem:[#allocation2] sm:$0xff] %vm36_vm0, %v1241_v1  ;;  %s1242_s7 = smov 17   ;;  %v94_v11 = vld [vmem:[#allocation3 + $0x8] sm:$0xff]  ;;  %s1243_s0 = smov 2   ;;  %vm105_vm6 = vcmask 1047688   ;;  %vm134_vm7 = vcmask 130048  }
  0x15   :  { %v41_v2 = vand.u32 127, %v40_v0  ;;  %39 = vst.msk [vmem:[#allocation2 + $0x10] sm:$0xff] %vm38_vm1, %v1241_v1  ;;  %97 = vrot.lane.b32.xlu0 %v93_v6, %s1242_s7  ;;  %s1244_s8 = smov 18   ;;  %s1245_s9 = smov 32   ;;  %vm120_vm8 = vcmask 15360   ;;  %vm146_vm9 = vcmask 146432  }
  0x16   :  { %s1246_s10 = smov 34   ;;  %s1247_s11 = smov 111   ;;  %vm158_vm10 = vcmask 261120   ;;  %vm170_vm11 = vcmask 277504   ;;  %v1254_v58 = vmov 0   ;;  %v79_v61 = vld [vmem:[%s1767_s2] sm:$0xff] }
  0x17   :  { %v42_v3 = vadd.s32 128, %v41_v2  ;;  %v47_v4 = vand.u32 15, %v41_v2  ;;  %s1248_s12 = smov 127   ;;  %s1249_s13 = smov 95   ;;  %337 = vmatprep.mubr.bf16.mxu0 %v1254_v58  ;;  %1046 = vset.pattern.permute.xlu1 %v1254_v58  ;;  %vm187_vm12 = vcmask 1039360   ;;  %vm201_vm13 = vcmask 1031168  }
  0x18   :  { %s1250_s14 = smov 112   ;;  %s1251_s15 = smov 110   ;;  %530 = vmatprep.mubr.bf16.mxu1 %v1254_v58  ;;  %1187 = vset.pattern.permute.xlu0 %v1254_v58  ;;  %vm215_vm14 = vcmask 916480   ;;  %vm226_vm15 = vcmask 908288   ;;  %vm240_vm1 = vcmask 900096  }
  0x19   :  { %v54_v5 = vand.u32 15, %v42_v3  ;;  %vm67_vm2 = vcmp.ge.s32.totalorder %v47_v4, 1  ;;  %vm73_vm3 = vcmp.le.s32.totalorder %v47_v4, 14  ;;  %99 = vrot.lane.b32.xlu0 %v94_v11, %s1242_s7  ;;  %s1252_s16 = smov 126   ;;  %s1253_s17 = smov 96  }
  0x1a   :  { %v952_v7 = vsel %vm73_vm3, 1.0, %v1241_v1  ;;  %v1304_v9 = vsel %vm67_vm2, 1.0, %v1241_v1  ;;  %s1255_s18 = smov 94   ;;  %vm265_vm2 = vcmask 777216   ;;  %vm254_vm3 = vcmask 785408  }
  0x1b   :  { %vm68_vm4 = vcmp.ge.s32.totalorder %v54_v5, 1  ;;  %vm74_vm5 = vcmp.le.s32.totalorder %v54_v5, 14 }
  0x1c   :  { %v953_v8 = vsel %vm74_vm5, 1.0, %v1241_v1  ;;  %v1306_v10 = vsel %vm68_vm4, 1.0, %v1241_v1  ;;  %vm279_vm4 = vcmask 769024   ;;  %vm298_vm5 = vcmask 1043456  }
  0x1d   :  { %v981_v12 = vpack.i.bf16 %v953_v8, %v952_v7  ;;  %v986_v13 = vpack.i.bf16 %v1306_v10, %v1304_v9 }
  0x1f   :  { %982 = vrot.lane.b32.xlu1 %v981_v12, %s1243_s0  ;;  %992 = vrot.lane.b32.xlu0 %v981_v12, %s1244_s8 }
  0x23   :  { %987 = vrot.lane.b32.xlu1 %v986_v13, %s1240_s29  ;;  %1002 = vrot.lane.b32.xlu0 %v981_v12, %s1246_s10 }
  0x27   :  { %997 = vrot.lane.b32.xlu1 %v986_v13, %s1245_s9 }
  0x87   :  { %v98_v14 = vpop.permute.xlu0 %97 }
  0x88   :  { %106 = vst.msk [vmem:[#allocation2] sm:$0xff] %vm105_vm6, %v98_v14 }
  0x8b   :  { %v100_v15 = vpop.permute.xlu0 %99 }
  0x8c   :  { %108 = vst.msk [vmem:[#allocation2 + $0x10] sm:$0xff] %vm36_vm0, %v100_v15  ;;  %v1323_v20 = vsel %vm36_vm0, %v98_v14, %v100_v15 }
  0x8d   :  { %v112_v4 = vmul.f32 %v1306_v10, %v1323_v20 }
  0x8f   :  { %v1314_v17 = vld [vmem:[#allocation2] sm:$0xff] }
  0x90   :  { %220 = vrot.lane.b32.xlu1 %v1314_v17, %s1247_s11  ;;  %181 = vrot.lane.b32.xlu0 %v1314_v17, %s1248_s12  ;;  %v111_v5 = vmul.f32 %v1304_v9, %v1314_v17 }
  0x91   :  { %v983_v16 = vpop.permute.xlu1 %982  ;;  %v993_v24 = vpop.permute.xlu0 %992 }
  0x92   :  { %v1333_v25 = vunpack.i.h.bf16 %v983_v16  ;;  %v1335_v26 = vunpack.i.l.bf16 %v983_v16  ;;  %v1337_v27 = vunpack.i.l.bf16 %v993_v24  ;;  %v1341_v29 = vunpack.i.h.bf16 %v993_v24 }
  0x93   :  { %v1320_v19 = vld [vmem:[#allocation2 + $0x10] sm:$0xff] }
  0x94   :  { %v1006_v22 = vpack.i.bf16 %v1320_v19, %v1323_v20  ;;  %v125_v32 = vmul.f32 %v1335_v26, %v1314_v17  ;;  %v1353_v33 = vsel %vm120_vm8, %v1335_v26, %v1333_v25  ;;  %v151_v34 = vmul.f32 %v1337_v27, %v1314_v17 }
  0x95   :  { %v988_v18 = vpop.permute.xlu1 %987  ;;  %v127_v37 = vmul.f32 %v1333_v25, %v1320_v19  ;;  %v1369_v40 = vsel %vm146_vm9, %v1337_v27, %v1341_v29  ;;  %v1003_v41 = vpop.permute.xlu0 %1002  ;;  %v126_v42 = vmul.f32 %v1353_v33, %v1323_v20  ;;  %v153_v46 = vmul.f32 %v1341_v29, %v1320_v19 }
  0x96   :  { %v1325_v21 = vunpack.i.l.bf16 %v988_v18  ;;  %v1329_v23 = vunpack.i.h.bf16 %v988_v18  ;;  %1007 = vrot.lane.b32.xlu1 %v1006_v22, %s1248_s12  ;;  %1017 = vrot.lane.b32.xlu0 %v1006_v22, %s1249_s13  ;;  %v152_v45 = vmul.f32 %v1369_v40, %v1323_v20  ;;  %v1379_v47 = vunpack.i.h.bf16 %v1003_v41 }
  0x97   :  { %v1021_v44 = vpack.i.bf16 %v127_v37, %v126_v42  ;;  %v1381_v48 = vunpack.i.l.bf16 %v1003_v41 }
  0x98   :  { %v139_v28 = vmul.f32 %v1325_v21, %v1314_v17  ;;  %v1345_v30 = vsel %vm134_vm7, %v1325_v21, %v1329_v23  ;;  %v141_v36 = vmul.f32 %v1329_v23, %v1320_v19  ;;  %v1031_v50 = vpack.i.bf16 %v153_v46, %v152_v45 }
  0x99   :  { %v998_v31 = vpop.permute.xlu1 %997  ;;  %v140_v35 = vmul.f32 %v1345_v30, %v1323_v20  ;;  %v1397_v54 = vsel %vm170_vm11, %v1381_v48, %v1379_v47  ;;  %v175_v56 = vmul.f32 %v1381_v48, %v1314_v17  ;;  %v177_v59 = vmul.f32 %v1379_v47, %v1320_v19 }
  0x9a   :  { %1012 = vrot.lane.b32.xlu1 %v1006_v22, %s1247_s11  ;;  %209 = vrot.lane.b32.xlu0 %v139_v28, %s1250_s14  ;;  %v1363_v38 = vunpack.i.h.bf16 %v998_v31  ;;  %v1365_v39 = vunpack.i.l.bf16 %v998_v31  ;;  %v176_v57 = vmul.f32 %v1397_v54, %v1323_v20  ;;  %vm294_vm7 = vcmask 588800  }
  0x9b   :  { %v1026_v43 = vpack.i.bf16 %v141_v36, %v140_v35 }
  0x9c   :  { %v1385_v49 = vsel %vm158_vm10, %v1365_v39, %v1363_v38  ;;  %v163_v51 = vmul.f32 %v1365_v39, %v1314_v17  ;;  %v165_v53 = vmul.f32 %v1363_v38, %v1320_v19  ;;  %v1041_v60 = vpack.i.bf16 %v176_v57, %v175_v56 }
  0x9d   :  { %v164_v52 = vmul.f32 %v1385_v49, %v1323_v20 }
  0x9e   :  { %234 = vrot.lane.b32.xlu0 %v151_v34, %s1251_s15  ;;  %195 = vrot.lane.b32.xlu1 %v125_v32, %s1252_s16 }
  0x9f   :  { %v1036_v55 = vpack.i.bf16 %v165_v53, %v164_v52 }
  0xa2   :  { %1027 = vrot.lane.b32.xlu0 %v1026_v43, %s1250_s14  ;;  %1022 = vrot.lane.b32.xlu1 %v1021_v44, %s1252_s16 }
  0xa6   :  { %1032 = vrot.lane.b32.xlu0 %v1031_v50, %s1251_s15  ;;  %248 = vrot.lane.b32.xlu1 %v163_v51, %s1253_s17 }
  0xaa   :  { %259 = vrot.lane.b32.xlu0 %v1314_v17, %s1249_s13  ;;  %1037 = vrot.lane.b32.xlu1 %v1036_v55, %s1253_s17 }
  0xae   :  { %277 = vrot.lane.b32.xlu0 %v177_v59, %s1255_s18  ;;  %1042 = vrot.lane.b32.xlu1 %v1041_v60, %s1255_s18 }
  0xb2   :  { %82 = vperm.xlu1 %1046, %v79_v61  }
 0x102   :  { %v221_v62 = vpop.permute.xlu1 %220  ;;  %v182_v63 = vpop.permute.xlu0 %181 }
 0x108   :  { %v1008_v0 = vpop.permute.xlu1 %1007  ;;  %v1018_v1 = vpop.permute.xlu0 %1017 }
 0x109   :  { %v1010_v2 = vunpack.i.h.bf16 %v1008_v0  ;;  %v1009_v3 = vunpack.i.l.bf16 %v1008_v0  ;;  %v1020_v45 = vunpack.i.h.bf16 %v1018_v1  ;;  %v1019_v46 = vunpack.i.l.bf16 %v1018_v1 }
 0x10b   :  { %v189_v6 = vsel %vm187_vm12, %v1009_v3, %v1010_v2  ;;  %v188_v7 = vsel %vm187_vm12, %v182_v63, %v1009_v3  ;;  %v267_v1 = vsel %vm265_vm2, %v1019_v46, %v1020_v45 }
 0x10c   :  { %v1013_v8 = vpop.permute.xlu1 %1012  ;;  %v210_v11 = vpop.permute.xlu0 %209  ;;  %v285_v12 = vpack.c.bf16 %v189_v6, %v112_v4  ;;  %v284_v13 = vpack.c.bf16 %v188_v7, %v111_v5 }
 0x10d   :  { %v1015_v24 = vunpack.i.h.bf16 %v1013_v8  ;;  %v1014_v28 = vunpack.i.l.bf16 %v1013_v8 }
 0x10e   :  { %305 = vmatprep.subr.bf16.mxu0 %v285_v12 }
 0x10f   :  { %306 = vmatpush1.bf16.msra.mxu0 %v284_v13  ;;  %v228_v50 = vsel %vm226_vm15, %v1014_v28, %v1015_v24  ;;  %v227_v52 = vsel %vm226_vm15, %v221_v62, %v1014_v28 }
 0x110   :  { %v235_v14 = vpop.permute.xlu0 %234  ;;  %v196_v15 = vpop.permute.xlu1 %195 }
 0x114   :  { %v1028_v16 = vpop.permute.xlu0 %1027  ;;  %v1023_v18 = vpop.permute.xlu1 %1022 }
 0x115   :  { %v1030_v19 = vunpack.i.h.bf16 %v1028_v16  ;;  %v1029_v20 = vunpack.i.l.bf16 %v1028_v16  ;;  %v1025_v22 = vunpack.i.h.bf16 %v1023_v18  ;;  %v1024_v17 = vunpack.i.l.bf16 %v1023_v18 }
 0x117   :  { %v203_v31 = vsel %vm201_vm13, %v1024_v17, %v1025_v22  ;;  %v217_v32 = vsel %vm215_vm14, %v1029_v20, %v1030_v19  ;;  %v202_v34 = vsel %vm201_vm13, %v196_v15, %v1024_v17  ;;  %v216_v35 = vsel %vm215_vm14, %v210_v11, %v1029_v20  ;;  %v1444_v15 = vld [vmem:[%s1766_s1] sm:$0xf] }
 0x118   :  { %v1033_v36 = vpop.permute.xlu0 %1032  ;;  %v249_v37 = vpop.permute.xlu1 %248  ;;  %v287_v41 = vpack.c.bf16 %v217_v32, %v203_v31  ;;  %v286_v42 = vpack.c.bf16 %v216_v35, %v202_v34  ;;  %v1455_v32 = vld [vmem:[#allocation3 + $0x10] sm:$0xff]  ;;  %v1457_v34 = vld [vmem:[#allocation3 + $0x18] sm:$0xff] }
 0x119   :  { %v1035_v43 = vunpack.i.h.bf16 %v1033_v36  ;;  %v1034_v44 = vunpack.i.l.bf16 %v1033_v36 }
 0x11a   :  { %307 = vmatprep.subr.bf16.mxu0 %v287_v41 }
 0x11b   :  { %308 = vmatpush1.bf16.msra.mxu0 %v286_v42  ;;  %v242_v51 = vsel %vm240_vm1, %v1034_v44, %v1035_v43  ;;  %v241_v53 = vsel %vm240_vm1, %v235_v14, %v1034_v44 }
 0x11c   :  { %v260_v55 = vpop.permute.xlu0 %259  ;;  %v1038_v56 = vpop.permute.xlu1 %1037  ;;  %v289_v57 = vpack.c.bf16 %v242_v51, %v228_v50  ;;  %v288_v59 = vpack.c.bf16 %v241_v53, %v227_v52 }
 0x11d   :  { %v1040_v60 = vunpack.i.h.bf16 %v1038_v56  ;;  %v1039_v61 = vunpack.i.l.bf16 %v1038_v56  ;;  %v266_v63 = vsel %vm265_vm2, %v260_v55, %v1019_v46 }
 0x11e   :  { %309 = vmatprep.subr.bf16.mxu0 %v289_v57 }
 0x11f   :  { %310 = vmatpush1.bf16.msra.mxu0 %v288_v59  ;;  %v256_v0 = vsel %vm254_vm3, %v1039_v61, %v1040_v60  ;;  %v255_v62 = vsel %vm254_vm3, %v249_v37, %v1039_v61 }
 0x120   :  { %v1043_v2 = vpop.permute.xlu1 %1042  ;;  %v291_v3 = vpack.c.bf16 %v267_v1, %v256_v0  ;;  %v290_v4 = vpack.c.bf16 %v266_v63, %v255_v62  ;;  %v278_v7 = vpop.permute.xlu0 %277 }
 0x121   :  { %v1045_v5 = vunpack.i.h.bf16 %v1043_v2  ;;  %v1044_v6 = vunpack.i.l.bf16 %v1043_v2 }
 0x122   :  { %311 = vmatprep.subr.bf16.mxu0 %v291_v3 }
 0x123   :  { %v281_v8 = vsel %vm279_vm4, %v1045_v5, %v278_v7  ;;  %312 = vmatpush1.bf16.msra.mxu0 %v290_v4  ;;  %v280_v11 = vsel %vm279_vm4, %v1044_v6, %v1045_v5 }
 0x124   :  { %v293_v12 = vpack.c.bf16 %v281_v8, %v281_v8  ;;  %v292_v13 = vpack.c.bf16 %v280_v11, %v280_v11 }
 0x126   :  { %954 = vmatprep.subr.msk.bf16.mxu0 %vm298_vm5, %v293_v12  ;;  %v300_v14 = vsel %vm298_vm5, %v292_v13, 0 }
 0x127   :  { %314 = vmatpush1.bf16.msra.mxu0 %v300_v14 }
 0x12a   :  { %955 = vmatmul.mubr.msk.bf16.vlgmr.msra.gmra.mrb[0].mxu0 %vm294_vm7, %v1444_v15 }
 0x12b   :  { %727 = vmatprep.mubr.bf16.mxu0 %v1254_v58 }
 0x131   :  { %v1449_v16 = vpop.permute.xlu1 %82 }
 0x1fd   :  { %v339_v18 = vpop.f32.mrb[0].mxu0 }
 0x1fe   :  { %v340_v19 = vadd.f32 %v339_v18, %v1449_v16  ;;  %v341_v20 = vpop.f32.mrb[1].mxu0 }
 0x1ff   :  { %v342_v22 = vadd.f32 %v341_v20, %v1449_v16  ;;  %v343_v17 = vpop.f32.mrb[2].mxu0 }
 0x200   :  { %v346_v24 = vmax.f32 %v340_v19, 0.0  ;;  %v344_v28 = vpop.f32.mrb[3].mxu0 }
 0x201   :  { %v347_v31 = vmax.f32 %v342_v22, 0.0 }
 0x202   :  { %350 = vrot.lane.b32.xlu0 %v346_v24, %s1242_s7 }
 0x203   :  { %352 = vrot.lane.b32.xlu1 %v347_v31, %s1242_s7 }
 0x206   :  { %550 = vrot.lane.b32.xlu0 %v1455_v32, %s1242_s7 }
 0x207   :  { %552 = vrot.lane.b32.xlu1 %v1457_v34, %s1242_s7 }
 0x274   :  { %v351_v35 = vpop.permute.xlu0 %350 }
 0x275   :  { %358 = vst.msk [vmem:[#allocation2] sm:$0xff] %vm105_vm6, %v351_v35  ;;  %v353_v36 = vpop.permute.xlu1 %352 }
 0x276   :  { %v1465_v37 = vsel %vm36_vm0, %v351_v35, %v353_v36  ;;  %360 = vst.msk [vmem:[#allocation2 + $0x10] sm:$0xff] %vm36_vm0, %v353_v36 }
 0x277   :  { %v1475_v45 = vmul.f32 %v1465_v37, %v1345_v30  ;;  %v1479_v46 = vmul.f32 %v1465_v37, %v1353_v33  ;;  %v1483_v50 = vmul.f32 %v1465_v37, %v1369_v40  ;;  %v1504_v56 = vmul.f32 %v1465_v37, %v1385_v49 }
 0x278   :  { %v551_v42 = vpop.permute.xlu0 %550 }
 0x279   :  { %v553_v44 = vpop.permute.xlu1 %552 }
 0x27a   :  { %v554_v1 = vsel %vm36_vm0, %v551_v42, %v553_v44 }
 0x27b   :  { %v570_v8 = vmul.f32 %v554_v1, %v1345_v30  ;;  %v567_v11 = vmul.f32 %v554_v1, %v1353_v33  ;;  %v573_v18 = vmul.f32 %v554_v1, %v1369_v40  ;;  %v576_v17 = vmul.f32 %v554_v1, %v1385_v49 }
 0x27c   :  { %v1468_v41 = vld [vmem:[#allocation2] sm:$0xff]  ;;  %v579_v31 = vmul.f32 %v554_v1, %v1397_v54 }
 0x27d   :  { %v1470_v43 = vld [vmem:[#allocation2 + $0x10] sm:$0xff]  ;;  %558 = vst.msk [vmem:[#allocation2] sm:$0xff] %vm105_vm6, %v551_v42 }
 0x27e   :  { %560 = vst.msk [vmem:[#allocation2 + $0x10] sm:$0xff] %vm36_vm0, %v553_v44  ;;  %v1488_v51 = vpack.i.bf16 %v1470_v43, %v1465_v37  ;;  %v1492_v52 = vmul.f32 %v1329_v23, %v1470_v43  ;;  %v1496_v53 = vmul.f32 %v1333_v25, %v1470_v43  ;;  %v1500_v55 = vmul.f32 %v1341_v29, %v1470_v43 }
 0x27f   :  { %v1508_v57 = vmul.f32 %v1363_v38, %v1470_v43 }
 0x280   :  { %v1097_v59 = vpack.i.bf16 %v1492_v52, %v1475_v45  ;;  %v1092_v60 = vpack.i.bf16 %v1496_v53, %v1479_v46  ;;  %v1107_v61 = vpack.i.bf16 %v1500_v55, %v1483_v50 }
 0x281   :  { %v1112_v63 = vpack.i.bf16 %v1508_v57, %v1504_v56  ;;  %v369_v57 = vmul.f32 %v1325_v21, %v1468_v41 }
 0x284   :  { %v561_v0 = vld [vmem:[#allocation2] sm:$0xff] }
 0x285   :  { %620 = vrot.lane.b32.xlu0 %v561_v0, %s1247_s11  ;;  %584 = vrot.lane.b32.xlu1 %v561_v0, %s1248_s12  ;;  %v565_v62 = vld [vmem:[#allocation2 + $0x10] sm:$0xff]  ;;  %v569_v3 = vmul.f32 %v1325_v21, %v561_v0  ;;  %v572_v4 = vmul.f32 %v1337_v27, %v561_v0  ;;  %v566_v5 = vmul.f32 %v1335_v26, %v561_v0 }
 0x286   :  { %v1047_v2 = vpack.i.bf16 %v565_v62, %v554_v1  ;;  %v571_v6 = vmul.f32 %v1329_v23, %v565_v62  ;;  %v568_v7 = vmul.f32 %v1333_v25, %v565_v62  ;;  %v574_v14 = vmul.f32 %v1341_v29, %v565_v62 }
 0x287   :  { %v575_v20 = vmul.f32 %v1365_v39, %v561_v0  ;;  %v577_v22 = vmul.f32 %v1363_v38, %v565_v62  ;;  %v578_v28 = vmul.f32 %v1381_v48, %v561_v0  ;;  %v580_v35 = vmul.f32 %v1379_v47, %v565_v62 }
 0x288   :  { %v1067_v12 = vpack.i.bf16 %v571_v6, %v570_v8  ;;  %v1062_v13 = vpack.i.bf16 %v568_v7, %v567_v11  ;;  %v1072_v19 = vpack.i.bf16 %v574_v14, %v573_v18  ;;  %v563_v6 = vmul.f32 %v1304_v9, %v561_v0 }
 0x289   :  { %610 = vrot.lane.b32.xlu1 %v569_v3, %s1250_s14  ;;  %1048 = vrot.lane.b32.xlu0 %v1047_v2, %s1248_s12  ;;  %v1077_v24 = vpack.i.bf16 %v577_v22, %v576_v17  ;;  %v1082_v36 = vpack.i.bf16 %v579_v31, %v578_v28  ;;  %v564_v7 = vmul.f32 %v1306_v10, %v554_v1 }
 0x28d   :  { %633 = vrot.lane.b32.xlu1 %v572_v4, %s1251_s15  ;;  %597 = vrot.lane.b32.xlu0 %v566_v5, %s1252_s16 }
 0x291   :  { %1058 = vrot.lane.b32.xlu1 %v1047_v2, %s1249_s13  ;;  %1053 = vrot.lane.b32.xlu0 %v1047_v2, %s1247_s11 }
 0x295   :  { %1068 = vrot.lane.b32.xlu1 %v1067_v12, %s1250_s14  ;;  %1063 = vrot.lane.b32.xlu0 %v1062_v13, %s1252_s16 }
 0x299   :  { %1073 = vrot.lane.b32.xlu1 %v1072_v19, %s1251_s15  ;;  %646 = vrot.lane.b32.xlu0 %v575_v20, %s1253_s17 }
 0x29d   :  { %656 = vrot.lane.b32.xlu1 %v561_v0, %s1249_s13  ;;  %1078 = vrot.lane.b32.xlu0 %v1077_v24, %s1253_s17 }
 0x2a1   :  { %673 = vrot.lane.b32.xlu1 %v580_v35, %s1255_s18  ;;  %1083 = vrot.lane.b32.xlu0 %v1082_v36, %s1255_s18 }
 0x2f7   :  { %v621_v42 = vpop.permute.xlu0 %620  ;;  %v585_v44 = vpop.permute.xlu1 %584 }
 0x2fb   :  { %v611_v2 = vpop.permute.xlu1 %610  ;;  %v1049_v3 = vpop.permute.xlu0 %1048 }
 0x2fc   :  { %v1051_v4 = vunpack.i.h.bf16 %v1049_v3  ;;  %v1050_v5 = vunpack.i.l.bf16 %v1049_v3 }
 0x2fe   :  { %v590_v8 = vsel %vm187_vm12, %v585_v44, %v1050_v5  ;;  %v591_v11 = vsel %vm187_vm12, %v1050_v5, %v1051_v4 }
 0x2ff   :  { %v679_v62 = vpack.c.bf16 %v590_v8, %v563_v6  ;;  %v634_v12 = vpop.permute.xlu1 %633  ;;  %v598_v13 = vpop.permute.xlu0 %597  ;;  %v680_v14 = vpack.c.bf16 %v591_v11, %v564_v7 }
 0x301   :  { %695 = vmatprep.subr.bf16.mxu0 %v680_v14 }
 0x302   :  { %696 = vmatpush1.bf16.msra.mxu0 %v679_v62 }
 0x303   :  { %v1059_v18 = vpop.permute.xlu1 %1058  ;;  %v1054_v19 = vpop.permute.xlu0 %1053 }
 0x304   :  { %v1056_v31 = vunpack.i.h.bf16 %v1054_v19  ;;  %v1055_v1 = vunpack.i.l.bf16 %v1054_v19  ;;  %v1061_v62 = vunpack.i.h.bf16 %v1059_v18  ;;  %v1060_v14 = vunpack.i.l.bf16 %v1059_v18 }
 0x307   :  { %v1069_v20 = vpop.permute.xlu1 %1068  ;;  %v1064_v22 = vpop.permute.xlu0 %1063 }
 0x308   :  { %v1071_v17 = vunpack.i.h.bf16 %v1069_v20  ;;  %v1070_v24 = vunpack.i.l.bf16 %v1069_v20  ;;  %v1066_v28 = vunpack.i.h.bf16 %v1064_v22  ;;  %v1065_v0 = vunpack.i.l.bf16 %v1064_v22 }
 0x309   :  { %v626_v20 = vsel %vm226_vm15, %v621_v42, %v1055_v1 }
 0x30a   :  { %v616_v35 = vsel %vm215_vm14, %v611_v2, %v1070_v24  ;;  %v603_v36 = vsel %vm201_vm13, %v598_v13, %v1065_v0  ;;  %v604_v44 = vsel %vm201_vm13, %v1065_v0, %v1066_v28  ;;  %v617_v3 = vsel %vm215_vm14, %v1070_v24, %v1071_v17 }
 0x30b   :  { %v681_v4 = vpack.c.bf16 %v616_v35, %v603_v36  ;;  %v1074_v5 = vpop.permute.xlu1 %1073  ;;  %v647_v6 = vpop.permute.xlu0 %646  ;;  %v682_v7 = vpack.c.bf16 %v617_v3, %v604_v44  ;;  %v627_v2 = vsel %vm226_vm15, %v1055_v1, %v1056_v31 }
 0x30c   :  { %v1076_v8 = vunpack.i.h.bf16 %v1074_v5  ;;  %v1075_v11 = vunpack.i.l.bf16 %v1074_v5 }
 0x30d   :  { %697 = vmatprep.subr.bf16.mxu0 %v682_v7 }
 0x30e   :  { %v639_v19 = vsel %vm240_vm1, %v634_v12, %v1075_v11  ;;  %698 = vmatpush1.bf16.msra.mxu0 %v681_v4  ;;  %v640_v13 = vsel %vm240_vm1, %v1075_v11, %v1076_v8  ;;  %v663_v12 = vsel %vm265_vm2, %v1060_v14, %v1061_v62 }
 0x30f   :  { %v683_v22 = vpack.c.bf16 %v639_v19, %v626_v20  ;;  %v657_v17 = vpop.permute.xlu1 %656  ;;  %v1079_v24 = vpop.permute.xlu0 %1078  ;;  %v684_v28 = vpack.c.bf16 %v640_v13, %v627_v2 }
 0x310   :  { %v1081_v0 = vunpack.i.h.bf16 %v1079_v24  ;;  %v1080_v35 = vunpack.i.l.bf16 %v1079_v24  ;;  %v662_v36 = vsel %vm265_vm2, %v657_v17, %v1060_v14 }
 0x311   :  { %699 = vmatprep.subr.bf16.mxu0 %v684_v28  ;;  %v375_v28 = vmul.f32 %v1365_v39, %v1468_v41 }
 0x312   :  { %v652_v18 = vsel %vm254_vm3, %v647_v6, %v1080_v35  ;;  %700 = vmatpush1.bf16.msra.mxu0 %v683_v22  ;;  %v653_v42 = vsel %vm254_vm3, %v1080_v35, %v1081_v0  ;;  %v378_v0 = vmul.f32 %v1381_v48, %v1468_v41 }
 0x313   :  { %v685_v44 = vpack.c.bf16 %v662_v36, %v652_v18  ;;  %v1084_v31 = vpop.permute.xlu0 %1083  ;;  %v686_v1 = vpack.c.bf16 %v663_v12, %v653_v42  ;;  %v674_v5 = vpop.permute.xlu1 %673  ;;  %v379_v18 = vmul.f32 %v1465_v37, %v1397_v54  ;;  %v380_v42 = vmul.f32 %v1379_v47, %v1470_v43 }
 0x314   :  { %v1086_v3 = vunpack.i.h.bf16 %v1084_v31  ;;  %v1085_v4 = vunpack.i.l.bf16 %v1084_v31 }
 0x315   :  { %701 = vmatprep.subr.bf16.mxu0 %v686_v1  ;;  %v1142_v12 = vpack.i.bf16 %v379_v18, %v378_v0 }
 0x316   :  { %v676_v7 = vsel %vm279_vm4, %v1086_v3, %v674_v5  ;;  %702 = vmatpush1.bf16.msra.mxu0 %v685_v44  ;;  %v675_v8 = vsel %vm279_vm4, %v1085_v4, %v1086_v3 }
 0x317   :  { %v688_v11 = vpack.c.bf16 %v676_v7, %v676_v7  ;;  %v687_v20 = vpack.c.bf16 %v675_v8, %v675_v8 }
 0x319   :  { %958 = vmatprep.subr.msk.bf16.mxu0 %vm298_vm5, %v688_v11  ;;  %v690_v6 = vsel %vm298_vm5, %v687_v20, 0 }
 0x31a   :  { %704 = vmatpush1.bf16.msra.mxu0 %v690_v6 }
 0x31d   :  { %959 = vmatmul.mubr.msk.bf16.vlgmr.msra.gmra.mrb[4].mxu0 %vm294_vm7, %v1444_v15  ;;  %v372_v15 = vmul.f32 %v1337_v27, %v1468_v41 }
 0x3f0   :  { %v729_v62 = vpop.f32.mrb[4].mxu0 }
 0x3f1   :  { %v730_v14 = vadd.f32 %v729_v62, %v1449_v16  ;;  %v731_v19 = vpop.f32.mrb[5].mxu0 }
 0x3f2   :  { %v732_v2 = vadd.f32 %v731_v19, %v1449_v16  ;;  %v733_v13 = vpop.f32.mrb[6].mxu0 }
 0x3f3   :  { %v736_v22 = vmax.f32 %v730_v14, 0.0  ;;  %v734_v17 = vpop.f32.mrb[7].mxu0 }
 0x3f4   :  { %v737_v24 = vmax.f32 %v732_v2, 0.0 }
 0x3f5   :  { %740 = vrot.lane.b32.xlu0 %v736_v22, %s1242_s7 }
 0x3f6   :  { %742 = vrot.lane.b32.xlu1 %v737_v24, %s1242_s7 }
 0x3f9   :  { %1088 = vrot.lane.b32.xlu0 %v1488_v51, %s1248_s12 }
 0x3fa   :  { %1098 = vrot.lane.b32.xlu1 %v1097_v59, %s1250_s14  ;;  %v366_v59 = vmul.f32 %v1335_v26, %v1468_v41 }
 0x3fd   :  { %1093 = vrot.lane.b32.xlu0 %v1092_v60, %s1252_s16 }
 0x3fe   :  { %1108 = vrot.lane.b32.xlu1 %v1107_v61, %s1251_s15 }
 0x401   :  { %1103 = vrot.lane.b32.xlu0 %v1488_v51, %s1247_s11 }
 0x402   :  { %433 = vrot.lane.b32.xlu1 %v372_v15, %s1251_s15 }
 0x405   :  { %1113 = vrot.lane.b32.xlu0 %v1112_v63, %s1253_s17 }
 0x406   :  { %1118 = vrot.lane.b32.xlu1 %v1488_v51, %s1249_s13 }
 0x467   :  { %v741_v16 = vpop.permute.xlu0 %740 }
 0x468   :  { %748 = vst.msk [vmem:[#allocation2] sm:$0xff] %vm105_vm6, %v741_v16  ;;  %v743_v45 = vpop.permute.xlu1 %742 }
 0x469   :  { %v1603_v46 = vsel %vm36_vm0, %v741_v16, %v743_v45  ;;  %750 = vst.msk [vmem:[#allocation2 + $0x10] sm:$0xff] %vm36_vm0, %v743_v45 }
 0x46a   :  { %v1127_v50 = vpack.i.bf16 %v1603_v46, %v1468_v41  ;;  %v760_v52 = vmul.f32 %v1603_v46, %v1345_v30  ;;  %v757_v53 = vmul.f32 %v1603_v46, %v1353_v33  ;;  %v364_v30 = vmul.f32 %v1306_v10, %v1465_v37 }
 0x46b   :  { %v1612_v55 = vpop.permute.xlu0 %1088 }
 0x46c   :  { %v1091_v51 = vunpack.i.h.bf16 %v1612_v55  ;;  %v1090_v56 = vunpack.i.l.bf16 %v1612_v55  ;;  %1128 = vrot.lane.b32.xlu0 %v1127_v50, %s1247_s11  ;;  %1123 = vrot.lane.b32.xlu1 %v1127_v50, %s1248_s12  ;;  %v1137_v60 = vpack.i.bf16 %v760_v52, %v369_v57  ;;  %v1132_v61 = vpack.i.bf16 %v757_v53, %v366_v59 }
 0x46d   :  { %v363_v52 = vmul.f32 %v1304_v9, %v1468_v41 }
 0x46e   :  { %v391_v33 = vsel %vm187_vm12, %v1090_v56, %v1091_v51 }
 0x46f   :  { %v480_v63 = vpack.c.bf16 %v391_v33, %v364_v30  ;;  %v1633_v35 = vld [vmem:[#allocation2] sm:$0xff]  ;;  %v1094_v20 = vpop.permute.xlu0 %1093 }
 0x470   :  { %1138 = vrot.lane.b32.xlu1 %v1137_v60, %s1250_s14  ;;  %1133 = vrot.lane.b32.xlu0 %v1132_v61, %s1252_s16  ;;  %v755_v36 = vld [vmem:[#allocation2 + $0x10] sm:$0xff]  ;;  %v756_v44 = vmul.f32 %v1335_v26, %v1633_v35  ;;  %v759_v4 = vmul.f32 %v1325_v21, %v1633_v35  ;;  %v765_v26 = vmul.f32 %v1365_v39, %v1633_v35  ;;  %v1096_v19 = vunpack.i.h.bf16 %v1094_v20 }
 0x471   :  { %498 = vmatprep.subr.bf16.mxu1 %v480_v63  ;;  %v758_v31 = vmul.f32 %v1333_v25, %v755_v36  ;;  %v1147_v3 = vpack.i.bf16 %v1633_v35, %v755_v36  ;;  %v761_v37 = vmul.f32 %v1329_v23, %v755_v36  ;;  %v762_v25 = vmul.f32 %v1337_v27, %v1633_v35 }
 0x472   :  { %v764_v5 = vmul.f32 %v1341_v29, %v755_v36  ;;  %v763_v21 = vmul.f32 %v1603_v46, %v1369_v40  ;;  %v1167_v23 = vpack.i.bf16 %v755_v36, %v1603_v46  ;;  %v767_v8 = vmul.f32 %v1363_v38, %v755_v36 }
 0x473   :  { %v1152_v1 = vpack.i.bf16 %v756_v44, %v758_v31  ;;  %v1157_v43 = vpack.i.bf16 %v759_v4, %v761_v37  ;;  %v766_v27 = vmul.f32 %v1603_v46, %v1385_v49  ;;  %v768_v39 = vmul.f32 %v1381_v48, %v1633_v35  ;;  %v85_v49 = vld [vmem:[%s1769_s4] sm:$0xff]  ;;  %v1099_v48 = vpop.permute.xlu1 %1098  ;;  %v1104_v62 = vpop.permute.xlu0 %1103 }
 0x474   :  { %456 = vrot.lane.b32.xlu1 %v1468_v41, %s1249_s13  ;;  %446 = vrot.lane.b32.xlu0 %v375_v28, %s1253_s17  ;;  %v1172_v7 = vpack.i.bf16 %v764_v5, %v763_v21  ;;  %v769_v40 = vmul.f32 %v1603_v46, %v1397_v54  ;;  %v770_v38 = vmul.f32 %v1379_v47, %v755_v36  ;;  %v1095_v2 = vunpack.i.l.bf16 %v1094_v20 }
 0x475   :  { %v1177_v29 = vpack.i.bf16 %v767_v8, %v766_v27  ;;  %v1101_v47 = vunpack.i.h.bf16 %v1099_v48  ;;  %v1100_v22 = vunpack.i.l.bf16 %v1099_v48  ;;  %v1106_v45 = vunpack.i.h.bf16 %v1104_v62 }
 0x476   :  { %v1182_v11 = vpack.i.bf16 %v769_v40, %v768_v39  ;;  %v404_v15 = vsel %vm201_vm13, %v1095_v2, %v1096_v19  ;;  %v1105_v50 = vunpack.i.l.bf16 %v1104_v62 }
 0x477   :  { %v1109_v6 = vpop.permute.xlu1 %1108  ;;  %v1114_v54 = vpop.permute.xlu0 %1113  ;;  %v417_v53 = vsel %vm215_vm14, %v1100_v22, %v1101_v47 }
 0x478   :  { %473 = vrot.lane.b32.xlu1 %v380_v42, %s1255_s18  ;;  %1143 = vrot.lane.b32.xlu0 %v1142_v12, %s1255_s18  ;;  %v1111_v51 = vunpack.i.h.bf16 %v1109_v6  ;;  %v1110_v57 = vunpack.i.l.bf16 %v1109_v6  ;;  %v482_v30 = vpack.c.bf16 %v417_v53, %v404_v15  ;;  %v1116_v33 = vunpack.i.h.bf16 %v1114_v54 }
 0x479   :  { %v1115_v60 = vunpack.i.l.bf16 %v1114_v54  ;;  %v427_v55 = vsel %vm226_vm15, %v1105_v50, %v1106_v45 }
 0x47b   :  { %v434_v14 = vpop.permute.xlu1 %433 }
 0x47c   :  { %1153 = vrot.lane.b32.xlu1 %v1152_v1, %s1252_s16  ;;  %1148 = vrot.lane.b32.xlu0 %v1147_v3, %s1248_s12 }
 0x47f   :  { %v1119_v13 = vpop.permute.xlu1 %1118 }
 0x480   :  { %1163 = vrot.lane.b32.xlu1 %v1147_v3, %s1247_s11  ;;  %1158 = vrot.lane.b32.xlu0 %v1157_v43, %s1250_s14  ;;  %v1121_v61 = vunpack.i.h.bf16 %v1119_v13  ;;  %v1120_v36 = vunpack.i.l.bf16 %v1119_v13  ;;  %v440_v3 = vsel %vm240_vm1, %v1110_v57, %v1111_v51  ;;  %v453_v43 = vsel %vm254_vm3, %v1115_v60, %v1116_v33 }
 0x481   :  { %v484_v4 = vpack.c.bf16 %v440_v3, %v427_v55 }
 0x484   :  { %823 = vrot.lane.b32.xlu1 %v762_v25, %s1251_s15  ;;  %836 = vrot.lane.b32.xlu0 %v765_v26, %s1253_s17  ;;  %v463_v25 = vsel %vm265_vm2, %v1120_v36, %v1121_v61  ;;  %v439_v26 = vsel %vm240_vm1, %v434_v14, %v1110_v57 }
 0x488   :  { %1168 = vrot.lane.b32.xlu1 %v1167_v23, %s1249_s13  ;;  %1173 = vrot.lane.b32.xlu0 %v1172_v7, %s1251_s15  ;;  %v486_v7 = vpack.c.bf16 %v463_v25, %v453_v43 }
 0x48c   :  { %846 = vrot.lane.b32.xlu1 %v1633_v35, %s1249_s13  ;;  %1178 = vrot.lane.b32.xlu0 %v1177_v29, %s1253_s17 }
 0x490   :  { %863 = vrot.lane.b32.xlu1 %v770_v38, %s1255_s18  ;;  %1183 = vrot.lane.b32.xlu0 %v1182_v11, %s1255_s18 }
 0x494   :  { %88 = vperm.xlu0 %1187, %v85_v49  }
 0x4de   :  { %v1683_v17 = vpop.permute.xlu1 %1123  ;;  %v1685_v24 = vpop.permute.xlu0 %1128 }
 0x4df   :  { %v1125_v16 = vunpack.i.l.bf16 %v1683_v17  ;;  %v1130_v41 = vunpack.i.l.bf16 %v1685_v24  ;;  %v1126_v6 = vunpack.i.h.bf16 %v1683_v17 }
 0x4e1   :  { %v390_v59 = vsel %vm187_vm12, %v1125_v16, %v1090_v56  ;;  %v426_v37 = vsel %vm226_vm15, %v1130_v41, %v1105_v50 }
 0x4e2   :  { %v1695_v63 = vpop.permute.xlu1 %1138  ;;  %v1697_v28 = vpop.permute.xlu0 %1133  ;;  %v479_v0 = vpack.c.bf16 %v390_v59, %v363_v52  ;;  %v483_v23 = vpack.c.bf16 %v439_v26, %v426_v37 }
 0x4e3   :  { %v1140_v18 = vunpack.i.l.bf16 %v1695_v63  ;;  %v1135_v42 = vunpack.i.l.bf16 %v1697_v28  ;;  %v1141_v47 = vunpack.i.h.bf16 %v1695_v63 }
 0x4e4   :  { %499 = vmatpush1.bf16.msra.mxu1 %v479_v0  ;;  %v1131_v0 = vunpack.i.h.bf16 %v1685_v24 }
 0x4e5   :  { %500 = vmatprep.subr.bf16.mxu1 %v482_v30  ;;  %v403_v56 = vsel %vm201_vm13, %v1135_v42, %v1095_v2  ;;  %v416_v12 = vsel %vm215_vm14, %v1140_v18, %v1100_v22  ;;  %v754_v2 = vmul.f32 %v1306_v10, %v1603_v46  ;;  %v1136_v22 = vunpack.i.h.bf16 %v1697_v28  ;;  %v92_v46 = vld [vmem:[%s1768_s3] sm:$0xf]  ;;  %s1256_s3 = smov [#allocation6]  }
 0x4e6   :  { %v457_v44 = vpop.permute.xlu1 %456  ;;  %v447_v31 = vpop.permute.xlu0 %446  ;;  %v481_v1 = vpack.c.bf16 %v416_v12, %v403_v56  ;;  %v753_v10 = vmul.f32 %v1304_v9, %v1633_v35  ;;  %s938_s24 = sshll.u32 %s1256_s3, 4  ;;  %s939_s24 = int_to_ptr.vmem [resolvable:$true] %s938_s24 }
 0x4e7   :  { %v462_v8 = vsel %vm265_vm2, %v457_v44, %v1120_v36  ;;  %v452_v27 = vsel %vm254_vm3, %v447_v31, %v1115_v60  ;;  %s1212_s25 = scalar_lea.vmem %s939_s24, 512  ;;  %p1217_p9 = scmp.lt.s32.totalorder %s939_s24, %s939_s24 }
 0x4e8   :  { %501 = vmatpush1.bf16.msra.mxu1 %v481_v1  ;;  %v485_v11 = vpack.c.bf16 %v462_v8, %v452_v27  ;;  %p1213_p8 = scmp.ne.s32.totalorder %s939_s24, %s1212_s25  ;;  %p1218_p10 = scmp.lt.s32.totalorder %s1212_s25, %s1212_s25 }
 0x4e9   :  { %502 = vmatprep.subr.bf16.mxu1 %v484_v4 }
 0x4ea   :  { %v474_v5 = vpop.permute.xlu1 %473  ;;  %v1144_v21 = vpop.permute.xlu0 %1143  ;;  %p1219_p11 = por %p1218_p10, %p1217_p9 }
 0x4eb   :  { %v1146_v29 = vunpack.i.h.bf16 %v1144_v21  ;;  %v1145_v39 = vunpack.i.l.bf16 %v1144_v21 }
 0x4ec   :  { %503 = vmatpush1.bf16.msra.mxu1 %v483_v23  ;;  %p1220_p12 = pnand %p1219_p11, %p1213_p8 }
 0x4ed   :  { %v476_v40 = vsel %vm279_vm4, %v1146_v29, %v474_v5  ;;  %504 = vmatprep.subr.bf16.mxu1 %v486_v7  ;;  %v475_v38 = vsel %vm279_vm4, %v1145_v39, %v1146_v29 }
 0x4ee   :  { %v488_v49 = vpack.c.bf16 %v476_v40, %v476_v40  ;;  %v1154_v48 = vpop.permute.xlu1 %1153  ;;  %v1149_v20 = vpop.permute.xlu0 %1148  ;;  %v487_v19 = vpack.c.bf16 %v475_v38, %v475_v38 }
 0x4ef   :  { %v1151_v62 = vunpack.i.h.bf16 %v1149_v20  ;;  %v1150_v14 = vunpack.i.l.bf16 %v1149_v20  ;;  %v1155_v54 = vunpack.i.l.bf16 %v1154_v48  ;;  %v1156_v51 = vunpack.i.h.bf16 %v1154_v48 }
 0x4f0   :  { %505 = vmatpush1.bf16.msra.mxu1 %v485_v11  ;;  %v493_v53 = vsel %vm298_vm5, %v487_v19, 0 }
 0x4f1   :  { %956 = vmatprep.subr.msk.bf16.mxu1 %vm298_vm5, %v488_v49  ;;  %v781_v13 = vsel %vm187_vm12, %v1126_v6, %v1150_v14  ;;  %v780_v17 = vsel %vm187_vm12, %v1151_v62, %v1126_v6  ;;  %v794_v57 = vsel %vm201_vm13, %v1136_v22, %v1155_v54  ;;  %v793_v28 = vsel %vm201_vm13, %v1156_v51, %v1136_v22 }
 0x4f2   :  { %v1164_v15 = vpop.permute.xlu1 %1163  ;;  %v1159_v16 = vpop.permute.xlu0 %1158  ;;  %v870_v45 = vpack.c.bf16 %v781_v13, %v754_v2  ;;  %v869_v30 = vpack.c.bf16 %v780_v17, %v753_v10  ;;  %v1188_v13 = vld [vmem:[#allocation3] sm:$0xff] }
 0x4f3   :  { %v1161_v50 = vunpack.i.h.bf16 %v1159_v16  ;;  %v1160_v52 = vunpack.i.l.bf16 %v1159_v16  ;;  %v1166_v9 = vunpack.i.h.bf16 %v1164_v15  ;;  %v1165_v35 = vunpack.i.l.bf16 %v1164_v15  ;;  %v1189_v15 = vld [vmem:[#allocation3 + $0x8] sm:$0xff] }
 0x4f4   :  { %507 = vmatpush1.bf16.msra.mxu1 %v493_v53 }
 0x4f5   :  { %885 = vmatprep.subr.bf16.mxu1 %v870_v45  ;;  %v807_v59 = vsel %vm215_vm14, %v1141_v47, %v1160_v52  ;;  %v806_v63 = vsel %vm215_vm14, %v1161_v50, %v1141_v47  ;;  %v816_v56 = vsel %vm226_vm15, %v1166_v9, %v1131_v0  ;;  %v817_v12 = vsel %vm226_vm15, %v1131_v0, %v1165_v35 }
 0x4f6   :  { %v824_v33 = vpop.permute.xlu1 %823  ;;  %v837_v60 = vpop.permute.xlu0 %836  ;;  %v872_v61 = vpack.c.bf16 %v807_v59, %v794_v57  ;;  %v871_v36 = vpack.c.bf16 %v806_v63, %v793_v28 }
 0x4f7   :  { %957 = vmatmul.mubr.msk.bf16.vlgmr.msra.gmra.mrb[0].mxu1 %vm294_vm7, %v92_v46 }
 0x4f8   :  { %886 = vmatpush1.bf16.msra.mxu1 %v869_v30  ;;  %917 = vmatprep.mubr.bf16.mxu1 %v1254_v58 }
 0x4f9   :  { %887 = vmatprep.subr.bf16.mxu1 %v872_v61 }
 0x4fa   :  { %v1169_v41 = vpop.permute.xlu1 %1168  ;;  %v1174_v18 = vpop.permute.xlu0 %1173 }
 0x4fb   :  { %v1176_v42 = vunpack.i.h.bf16 %v1174_v18  ;;  %v1175_v55 = vunpack.i.l.bf16 %v1174_v18  ;;  %v1171_v44 = vunpack.i.h.bf16 %v1169_v41  ;;  %v1170_v31 = vunpack.i.l.bf16 %v1169_v41 }
 0x4fc   :  { %888 = vmatpush1.bf16.msra.mxu1 %v871_v36 }
 0x4fd   :  { %v829_v1 = vsel %vm240_vm1, %v824_v33, %v1175_v55  ;;  %v830_v58 = vsel %vm240_vm1, %v1175_v55, %v1176_v42  ;;  %v853_v23 = vsel %vm265_vm2, %v1170_v31, %v1171_v44 }
 0x4fe   :  { %v873_v3 = vpack.c.bf16 %v829_v1, %v816_v56  ;;  %v847_v4 = vpop.permute.xlu1 %846  ;;  %v1179_v37 = vpop.permute.xlu0 %1178  ;;  %v874_v24 = vpack.c.bf16 %v830_v58, %v817_v12 }
 0x4ff   :  { %v1181_v43 = vunpack.i.h.bf16 %v1179_v37  ;;  %v1180_v25 = vunpack.i.l.bf16 %v1179_v37  ;;  %v852_v26 = vsel %vm265_vm2, %v847_v4, %v1170_v31 }
 0x500   :  { %889 = vmatprep.subr.bf16.mxu1 %v874_v24 }
 0x501   :  { %v842_v5 = vsel %vm254_vm3, %v837_v60, %v1180_v25  ;;  %890 = vmatpush1.bf16.msra.mxu1 %v873_v3  ;;  %v843_v21 = vsel %vm254_vm3, %v1180_v25, %v1181_v43 }
 0x502   :  { %v875_v7 = vpack.c.bf16 %v852_v26, %v842_v5  ;;  %v1184_v8 = vpop.permute.xlu0 %1183  ;;  %v876_v27 = vpack.c.bf16 %v853_v23, %v843_v21  ;;  %v864_v40 = vpop.permute.xlu1 %863 }
 0x503   :  { %v1186_v29 = vunpack.i.h.bf16 %v1184_v8  ;;  %v1185_v39 = vunpack.i.l.bf16 %v1184_v8 }
 0x504   :  { %891 = vmatprep.subr.bf16.mxu1 %v876_v27 }
 0x505   :  { %v866_v38 = vsel %vm279_vm4, %v1186_v29, %v864_v40  ;;  %892 = vmatpush1.bf16.msra.mxu1 %v875_v7  ;;  %v865_v11 = vsel %vm279_vm4, %v1185_v39, %v1186_v29 }
 0x506   :  { %v878_v49 = vpack.c.bf16 %v866_v38, %v866_v38  ;;  %v877_v48 = vpack.c.bf16 %v865_v11, %v865_v11 }
 0x508   :  { %960 = vmatprep.subr.msk.bf16.mxu1 %vm298_vm5, %v878_v49  ;;  %v880_v20 = vsel %vm298_vm5, %v877_v48, 0 }
 0x509   :  { %894 = vmatpush1.bf16.msra.mxu1 %v880_v20 }
 0x50c   :  { %961 = vmatmul.mubr.msk.bf16.vlgmr.msra.gmra.mrb[4].mxu1 %vm294_vm7, %v92_v46 }
 0x513   :  { %v89_v6 = vpop.permute.xlu0 %88 }
 0x5ca   :  { %v532_v62 = vpop.f32.mrb[0].mxu1 }
 0x5cb   :  { %v534_v14 = vpop.f32.mrb[1].mxu1  ;;  %v533_v19 = vadd.f32 %v532_v62, %v89_v6 }
 0x5cc   :  { %v535_v2 = vadd.f32 %v534_v14, %v89_v6  ;;  %v536_v54 = vpop.f32.mrb[2].mxu1 }
 0x5cd   :  { %v539_v47 = vadd.f32 %v1188_v13, %v533_v19  ;;  %v537_v22 = vpop.f32.mrb[3].mxu1 }
 0x5ce   :  { %v540_v16 = vadd.f32 %v1189_v15, %v535_v2 }
 0x5cf   :  { %v541_v45 = vmax.f32 %v539_v47, 0.0 }
 0x5d0   :  { %v542_v17 = vmax.f32 %v540_v16, 0.0 }
 0x5d1   :  { %543 = vst [vmem:[#allocation6] sm:$0xff] %v541_v45 }
 0x5d2   :  { %544 = vst [vmem:[#allocation6 + $0x8] sm:$0xff] %v542_v17 }
 0x5df   :  { %v919_v50 = vpop.f32.mrb[4].mxu1 }
 0x5e0   :  { %v920_v52 = vadd.f32 %v919_v50, %v89_v6  ;;  %v921_v53 = vpop.f32.mrb[5].mxu1 }
 0x5e1   :  { %v922_v10 = vadd.f32 %v921_v53, %v89_v6  ;;  %v923_v46 = vpop.f32.mrb[6].mxu1 }
 0x5e2   :  { %v926_v51 = vadd.f32 %v920_v52, %v1455_v32  ;;  %v924_v57 = vpop.f32.mrb[7].mxu1 }
 0x5e3   :  { %v927_v59 = vadd.f32 %v922_v10, %v1457_v34 }
 0x5e4   :  { %v928_v30 = vmax.f32 %v926_v51, 0.0 }
 0x5e5   :  { %v929_v33 = vmax.f32 %v927_v59, 0.0 }
 0x5e6   :  { %931 = vst [vmem:[#allocation6 + $0x10] sm:$0xff] %v928_v30 }
 0x5e7   :  { %932 = vst [vmem:[#allocation6 + $0x18] sm:$0xff] %v929_v33 }
 0x5e8   :  { %1223 = shalt.err (!%p1220_p12)
}
 0x5e9   :  { %s1224_s30 = scalar_lea.hbm %s1770_s5, 512 }
 0x5ea   :  { %p1225_p13 = scmp.ne.s32.totalorder %s1770_s5, %s1224_s30  ;;  %p1228_p0 = scmp.lt.u32.totalorder %s1224_s30, %s1770_s5 }
 0x5ec   :  { %p1230_p1 = pnand %p1228_p0, %p1225_p13 }
 0x5ee   :  { %1233 = shalt.err (!%p1230_p1)
}
 0x5ef   :  { %944 = dma.vmem_to_hbm [thread:$0]  %s939_s24, 512, %s1770_s5, [#allocation5], %s1239_s28, %s1239_s28, %s1240_s29  }
 0x5f0   :  { %1236 = dma.done.wait [#allocation5], 512  }
 0x5f1   :  { %1237 = vsyncadd [#allocation5], 4294966784 }
 0x5f2   :  { %948 = vsyncpa [#allocation4], 1 }
 0x5f3   :  { %949 = vsyncpa [#allocation5], 1 }

</bundles_post_ra>
